<compile_context>
chip_gen: v6e
topology: v6e:2x2x1
jax: 0.10.0
libtpu: 0.0.40
codegen_flags: <defaults>
</compile_context>

<pallas_src>
import functools

import jax
import jax.numpy as jnp
from jax.experimental import pallas as pl
from jax.experimental.pallas import tpu as pltpu


def _round_up(x, m):
    return (x + m - 1) // m * m


def _mlp_kernel(x_ref, w1_ref, b1_ref, w2_ref, b2_ref, o_ref):
    # Fused hot path: MXU matmul -> f32 bias + ReLU -> MXU matmul -> f32 bias.
    x = x_ref[...]                                                   # bf16 tile
    h = jnp.dot(x, w1_ref[...], preferred_element_type=jnp.float32)  # f32 acc
    h = jnp.maximum(h + b1_ref[...], 0.0)                            # f32 VPU
    y = jnp.dot(h.astype(w2_ref.dtype), w2_ref[...],
                preferred_element_type=jnp.float32) + b2_ref[...]
    o_ref[...] = y.astype(o_ref.dtype)


@functools.partial(jax.jit, static_argnames=("tile_m", "matmul_dtype"))
def clip_mlp_forward(img_emb, w1, b1, w2, b2, *, tile_m=256,
                     matmul_dtype=jnp.bfloat16):
    """img_emb: [B, D_in]; returns [B, D_out] (same dtype as img_emb)."""
    B, d_in = img_emb.shape
    hidden = w1.shape[1]
    d_out = w2.shape[1]
    out_dtype = img_emb.dtype
    mm_bytes = jnp.dtype(matmul_dtype).itemsize
    out_bytes_per = jnp.dtype(out_dtype).itemsize

    # Row tile: multiple of 16 (bf16 packs 16 sublanes/vreg), never bigger than
    # the (padded) batch needs.
    tile = max(16, min(tile_m, _round_up(B, 16)))

    # VMEM budget (v7x has only 64 MiB physical / 32 MiB scoped default):
    # double-buffered x/out tiles + (conservatively double-buffered) weights.
    def _vmem_bytes(t):
        io = 2 * t * d_in * mm_bytes + 2 * t * d_out * out_bytes_per
        w = 2 * (d_in * hidden + hidden * d_out) * mm_bytes
        b = 2 * (hidden + d_out) * 4
        return io + w + b

    while tile > 16 and _vmem_bytes(tile) > (24 << 20):
        tile //= 2

    # Pad the batch up to a tile multiple (crop after the kernel).
    B_pad = _round_up(B, tile)
    x = img_emb.astype(matmul_dtype)
    if B_pad != B:
        x = jnp.pad(x, ((0, B_pad - B), (0, 0)))

    w1m = w1.astype(matmul_dtype)
    w2m = w2.astype(matmul_dtype)
    b1_2d = b1.astype(jnp.float32).reshape(1, hidden)
    b2_2d = b2.astype(jnp.float32).reshape(1, d_out)

    grid = (B_pad // tile,)
    flops = 2 * B_pad * (d_in * hidden + hidden * d_out)
    bytes_accessed = (B_pad * d_in * mm_bytes
                      + (d_in * hidden + hidden * d_out) * mm_bytes
                      + (hidden + d_out) * 4
                      + B_pad * d_out * out_bytes_per)

    out = pl.pallas_call(
        _mlp_kernel,
        out_shape=jax.ShapeDtypeStruct((B_pad, d_out), out_dtype),
        grid=grid,
        in_specs=[
            pl.BlockSpec((tile, d_in), lambda i: (i, 0)),    # x tile
            pl.BlockSpec((d_in, hidden), lambda i: (0, 0)),  # W1 (resident)
            pl.BlockSpec((1, hidden), lambda i: (0, 0)),     # b1 (resident)
            pl.BlockSpec((hidden, d_out), lambda i: (0, 0)), # W2 (resident)
            pl.BlockSpec((1, d_out), lambda i: (0, 0)),      # b2 (resident)
        ],
        out_specs=pl.BlockSpec((tile, d_out), lambda i: (i, 0)),
        compiler_params=pltpu.CompilerParams(
            dimension_semantics=("parallel",)),
        cost_estimate=pl.CostEstimate(
            flops=flops, transcendentals=0, bytes_accessed=bytes_accessed),
    )(x, w1m, b1_2d, w2m, b2_2d)

    return out[:B] if B_pad != B else out


def _init_linear(key, fan_in, fan_out, dtype=jnp.float32):
    # Mirrors nn.Linear's default uniform(-1/sqrt(fan_in), +1/sqrt(fan_in)).
    kw, kb = jax.random.split(key)
    bound = 1.0 / jnp.sqrt(float(fan_in))
    w = jax.random.uniform(kw, (fan_in, fan_out), dtype, minval=-bound, maxval=bound)
    b = jax.random.uniform(kb, (fan_out,), dtype, minval=-bound, maxval=bound)
    return w, b


if __name__ == "__main__":
    # BLIP-base style config: fc_input_dim = fc_output_dim = 256, hidden = 128.
    batch = 8
    fc_input_dim = 256
    mlp_hiddenlayer_num = 128
    fc_output_dim = 256

    key = jax.random.PRNGKey(0)
    k_x, k_l1, k_l2 = jax.random.split(key, 3)

    img_emb = jax.random.normal(k_x, (batch, fc_input_dim), jnp.float32)
    w1, b1 = _init_linear(k_l1, fc_input_dim, mlp_hiddenlayer_num)
    w2, b2 = _init_linear(k_l2, mlp_hiddenlayer_num, fc_output_dim)

    out = clip_mlp_forward(img_emb, w1, b1, w2, b2)
    out = jax.block_until_ready(out)
    assert out.shape == (batch, fc_output_dim)

    # Reference 1: same bf16-input / f32-accumulate path in pure JAX.
    xb = img_emb.astype(jnp.bfloat16)
    h_ref = jnp.maximum(
        jnp.dot(xb, w1.astype(jnp.bfloat16),
                preferred_element_type=jnp.float32) + b1, 0.0)
    ref_bf16 = jnp.dot(h_ref.astype(jnp.bfloat16), w2.astype(jnp.bfloat16),
                       preferred_element_type=jnp.float32) + b2
    assert jnp.allclose(out, ref_bf16, atol=1e-3, rtol=1e-3)

    # Reference 2: full f32 PyTorch-equivalent math (loose tolerance for bf16 inputs).
    ref_f32 = jnp.maximum(img_emb @ w1 + b1, 0.0) @ w2 + b2
    assert jnp.allclose(out, ref_f32, atol=3e-2, rtol=3e-2)

    print("KERNEL_OK")
</pallas_src>

<mosaic_0001>
module attributes {stable_mosaic.version = 11 : i64} {
  func.func @_mlp_kernel(%arg0: i32, %arg1: memref<16x256xbf16, #tpu.memory_space<vmem>>, %arg2: memref<256x128xbf16, #tpu.memory_space<vmem>>, %arg3: memref<1x128xf32, #tpu.memory_space<vmem>>, %arg4: memref<128x256xbf16, #tpu.memory_space<vmem>>, %arg5: memref<1x256xf32, #tpu.memory_space<vmem>>, %arg6: memref<16x256xf32, #tpu.memory_space<vmem>>) attributes {dimension_semantics = [#tpu.dimension_semantics<parallel>], iteration_bounds = array<i64: 1>, scalar_prefetch = 0 : i64, scratch_operands = 0 : i64, tpu.core_type = #tpu.core_type<tc>, window_params = [{transform_indices = @transform_0, window_bounds = array<i64: 16, 256>}, {pipeline_mode = #tpu.pipeline_mode<synchronous>, transform_indices = @transform_1, window_bounds = array<i64: 256, 128>}, {pipeline_mode = #tpu.pipeline_mode<synchronous>, transform_indices = @transform_2, window_bounds = array<i64: 1, 128>}, {pipeline_mode = #tpu.pipeline_mode<synchronous>, transform_indices = @transform_3, window_bounds = array<i64: 128, 256>}, {pipeline_mode = #tpu.pipeline_mode<synchronous>, transform_indices = @transform_4, window_bounds = array<i64: 1, 256>}, {transform_indices = @transform_5, window_bounds = array<i64: 16, 256>}]} {
    %c0 = arith.constant 0 : index
    %c0_0 = arith.constant 0 : index
    %0 = vector.load %arg1[%c0, %c0_0] : memref<16x256xbf16, #tpu.memory_space<vmem>>, vector<16x256xbf16>
    %c0_1 = arith.constant 0 : index
    %c0_2 = arith.constant 0 : index
    %1 = vector.load %arg2[%c0_1, %c0_2] : memref<256x128xbf16, #tpu.memory_space<vmem>>, vector<256x128xbf16>
    %cst = arith.constant dense<0.000000e+00> : vector<16x128xf32>
    %2 = tpu.matmul %0, %1, %cst {dimension_numbers = #tpu.dot_dimension_numbers<[1], [0], [0], [1], [0, 0, 1, 1], [], []>} : vector<16x256xbf16>, vector<256x128xbf16>, vector<16x128xf32> -> vector<16x128xf32>
    %c0_3 = arith.constant 0 : index
    %c0_4 = arith.constant 0 : index
    %3 = vector.load %arg3[%c0_3, %c0_4] : memref<1x128xf32, #tpu.memory_space<vmem>>, vector<1x128xf32>
    %4 = vector.broadcast %3 : vector<1x128xf32> to vector<16x128xf32>
    %5 = arith.addf %2, %4 : vector<16x128xf32>
    %cst_5 = arith.constant 0.000000e+00 : f32
    %6 = vector.broadcast %cst_5 : f32 to vector<16x128xf32>
    %7 = arith.maximumf %5, %6 : vector<16x128xf32>
    %8 = arith.truncf %7 : vector<16x128xf32> to vector<16x128xbf16>
    %c0_6 = arith.constant 0 : index
    %c0_7 = arith.constant 0 : index
    %9 = vector.load %arg4[%c0_6, %c0_7] : memref<128x256xbf16, #tpu.memory_space<vmem>>, vector<128x256xbf16>
    %cst_8 = arith.constant dense<0.000000e+00> : vector<16x256xf32>
    %10 = tpu.matmul %8, %9, %cst_8 {dimension_numbers = #tpu.dot_dimension_numbers<[1], [0], [0], [1], [0, 0, 1, 1], [], []>} : vector<16x128xbf16>, vector<128x256xbf16>, vector<16x256xf32> -> vector<16x256xf32>
    %c0_9 = arith.constant 0 : index
    %c0_10 = arith.constant 0 : index
    %11 = vector.load %arg5[%c0_9, %c0_10] : memref<1x256xf32, #tpu.memory_space<vmem>>, vector<1x256xf32>
    %12 = vector.broadcast %11 : vector<1x256xf32> to vector<16x256xf32>
    %13 = arith.addf %10, %12 : vector<16x256xf32>
    %c0_11 = arith.constant 0 : index
    %c0_12 = arith.constant 0 : index
    %14 = vector.load %arg6[%c0_11, %c0_12] : memref<16x256xf32, #tpu.memory_space<vmem>>, vector<16x256xf32>
    tpu.vector_store %arg6[%c0_11, %c0_12], %13 {strides = array<i32>} : memref<16x256xf32, #tpu.memory_space<vmem>>, vector<16x256xf32>,
    return
  }
  func.func @transform_0(%arg0: i32) -> (i32, i32) {
    %c0_i32 = arith.constant 0 : i32
    %c0_i32_0 = arith.constant 0 : i32
    return %arg0, %c0_i32 : i32, i32
  }
  func.func @transform_1(%arg0: i32) -> (i32, i32) {
    %c0_i32 = arith.constant 0 : i32
    %c0_i32_0 = arith.constant 0 : i32
    %c0_i32_1 = arith.constant 0 : i32
    return %c0_i32, %c0_i32_0 : i32, i32
  }
  func.func @transform_2(%arg0: i32) -> (i32, i32) {
    %c0_i32 = arith.constant 0 : i32
    %c0_i32_0 = arith.constant 0 : i32
    %c0_i32_1 = arith.constant 0 : i32
    return %c0_i32, %c0_i32_0 : i32, i32
  }
  func.func @transform_3(%arg0: i32) -> (i32, i32) {
    %c0_i32 = arith.constant 0 : i32
    %c0_i32_0 = arith.constant 0 : i32
    %c0_i32_1 = arith.constant 0 : i32
    return %c0_i32, %c0_i32_0 : i32, i32
  }
  func.func @transform_4(%arg0: i32) -> (i32, i32) {
    %c0_i32 = arith.constant 0 : i32
    %c0_i32_0 = arith.constant 0 : i32
    %c0_i32_1 = arith.constant 0 : i32
    return %c0_i32, %c0_i32_0 : i32, i32
  }
  func.func @transform_5(%arg0: i32) -> (i32, i32) {
    %c0_i32 = arith.constant 0 : i32
    %c0_i32_0 = arith.constant 0 : i32
    return %arg0, %c0_i32 : i32, i32
  }
}

</mosaic_0001>

<bundles_post_ra>
// kernel: clip_mlp_forward.1
= control target key start
LH: loop header
LB: loop body
LE: loop exit
PB: predicated region body
PF: predicated region fallthrough
CT: control target
= control target key end

     0   :  { %v472_v34 = vmov 0   ;;  %v230_v47 = vlaneseq  ;;  %s623_s1 = inlined_call_operand.vmem [shape: bf16[256,128], index: 1, kind: input, shape index: {}]   ;;  %s624_s0 = inlined_call_operand.vmem [shape: bf16[16,256], index: 0, kind: input, shape index: {}]   ;;  %s625_s3 = inlined_call_operand.vmem [shape: bf16[128,256], index: 3, kind: input, shape index: {}]   ;;  %s626_s2 = inlined_call_operand.vmem [shape: f32[1,128], index: 2, kind: input, shape index: {}]   ;;  %s627_s4 = inlined_call_operand.vmem [shape: f32[1,256], index: 4, kind: input, shape index: {}]   ;;  %s628_s5 = inlined_call_operand.vmem [shape: f32[16,256], index: 5, kind: output, shape index: {}]  }
   0x1   :  { %v429_v0 = vld [vmem:[%s623_s1 + $0x78] sm:$0xff]   ;;  %v431_v2 = vld [vmem:[%s623_s1 + $0x70] sm:$0xff]   ;;  %v433_v4 = vld [vmem:[%s623_s1 + $0x68] sm:$0xff]   ;;  %352 = vmatprep.mubr.bf16.mxu1 %v472_v34 }
   0x2   :  { %v430_v1 = vld [vmem:[%s623_s1 + $0x38] sm:$0xff]   ;;  %406 = vmatprep.subr.bf16.mxu0 %v429_v0  ;;  %v432_v3 = vld [vmem:[%s623_s1 + $0x30] sm:$0xff]   ;;  %v434_v5 = vld [vmem:[%s623_s1 + $0x28] sm:$0xff]   ;;  %v231_v48 = vshrl.u32 %v230_v47, 7 }
   0x3   :  { %407 = vmatpush3.bf16.msra.mxu0 %v430_v1  ;;  %v435_v6 = vld [vmem:[%s623_s1 + $0x60] sm:$0xff]   ;;  %v437_v8 = vld [vmem:[%s623_s1 + $0x58] sm:$0xff]   ;;  %v439_v10 = vld [vmem:[%s623_s1 + $0x50] sm:$0xff]  }
   0x4   :  { %408 = vmatprep.subr.bf16.mxu0 %v431_v2  ;;  %v436_v7 = vld [vmem:[%s623_s1 + $0x20] sm:$0xff]   ;;  %v438_v9 = vld [vmem:[%s623_s1 + $0x18] sm:$0xff]   ;;  %v440_v14 = vld [vmem:[%s623_s1 + $0x10] sm:$0xff]   ;;  %v232_v49 = vsub.s32 0, %v231_v48  ;;  %v236_v51 = vsub.s32 1, %v231_v48 }
   0x5   :  { %v447_v11 = vld [vmem:[%s624_s0 + $0x4] ss:$8 sps:$4 sm:$0xff]   ;;  %v448_v12 = vld [vmem:[%s625_s3 + $0x74] ss:$8 sps:$4 sm:$0xff]   ;;  %v450_v13 = vld [vmem:[%s625_s3 + $0x70] ss:$8 sps:$4 sm:$0xff]  }
   0x6   :  { %200 = vmatprep.mubr.bf16.mxu0 %v447_v11  ;;  %v451_v15 = vld [vmem:[%s625_s3 + $0x64] ss:$8 sps:$4 sm:$0xff]   ;;  %320 = vmatprep.subr.bf16.mxu1 %v448_v12  ;;  %v453_v17 = vld [vmem:[%s625_s3 + $0x60] ss:$8 sps:$4 sm:$0xff]   ;;  %v454_v19 = vld [vmem:[%s625_s3 + $0x54] ss:$8 sps:$4 sm:$0xff]  }
   0x7   :  { %409 = vmatpush3.bf16.msra.mxu0 %v432_v3  ;;  %v441_v16 = vld [vmem:[%s623_s1 + $0x48] sm:$0xff]   ;;  %321 = vmatpush1.bf16.msra.mxu1 %v450_v13  ;;  %v443_v20 = vld [vmem:[%s623_s1 + $0x40] sm:$0xff]   ;;  %v456_v21 = vld [vmem:[%s625_s3 + $0x50] ss:$8 sps:$4 sm:$0xff]  }
   0x8   :  { %410 = vmatprep.subr.bf16.mxu0 %v433_v4  ;;  %v442_v18 = vld [vmem:[%s623_s1 + $0x8] sm:$0xff]   ;;  %322 = vmatprep.subr.bf16.mxu1 %v451_v15  ;;  %v444_v23 = vld [vmem:[%s623_s1] sm:$0xff]   ;;  %v460_v26 = vld [vmem:[%s625_s3 + $0x34] ss:$8 sps:$4 sm:$0xff]  }
   0x9   :  { %v457_v22 = vld [vmem:[%s625_s3 + $0x44] ss:$8 sps:$4 sm:$0xff]   ;;  %v459_v24 = vld [vmem:[%s625_s3 + $0x40] ss:$8 sps:$4 sm:$0xff]   ;;  %v462_v27 = vld [vmem:[%s625_s3 + $0x30] ss:$8 sps:$4 sm:$0xff]  }
   0xa   :  { %v445_v25 = vld [vmem:[%s624_s0] ss:$8 sps:$4 sm:$0xff]   ;;  %v463_v28 = vld [vmem:[%s625_s3 + $0x24] ss:$8 sps:$4 sm:$0xff]   ;;  %v466_v30 = vld [vmem:[%s625_s3 + $0x14] ss:$8 sps:$4 sm:$0xff]  }
   0xb   :  { %411 = vmatpush3.bf16.msra.mxu0 %v434_v5  ;;  %323 = vmatpush1.bf16.msra.mxu1 %v453_v17  ;;  %v465_v29 = vld [vmem:[%s625_s3 + $0x20] ss:$8 sps:$4 sm:$0xff]   ;;  %v468_v31 = vld [vmem:[%s625_s3 + $0x10] ss:$8 sps:$4 sm:$0xff]   ;;  %v469_v32 = vld [vmem:[%s625_s3 + $0x4] ss:$8 sps:$4 sm:$0xff]  }
   0xc   :  { %412 = vmatprep.subr.bf16.mxu0 %v435_v6  ;;  %324 = vmatprep.subr.bf16.mxu1 %v454_v19  ;;  %v471_v33 = vld [vmem:[%s625_s3] ss:$8 sps:$4 sm:$0xff]  }
   0xd   :  { %v371_v38 = vld [vmem:[%s626_s2] ss:$0 sm:$0xff] }
   0xe   :  { %v228_v50 = vld [vmem:[%s627_s4] sm:$0x3] }
   0xf   :  { %413 = vmatpush3.bf16.msra.mxu0 %v436_v7  ;;  %325 = vmatpush1.bf16.msra.mxu1 %v456_v21  ;;  %v233_v52 = vrot.slane %v228_v50, %v232_v49  ;;  %v237_v53 = vrot.slane %v228_v50, %v236_v51 }
  0x10   :  { %414 = vmatprep.subr.bf16.mxu0 %v437_v8  ;;  %326 = vmatprep.subr.bf16.mxu1 %v457_v22 }
  0x13   :  { %415 = vmatpush3.bf16.msra.mxu0 %v438_v9  ;;  %327 = vmatpush1.bf16.msra.mxu1 %v459_v24 }
  0x14   :  { %416 = vmatprep.subr.bf16.mxu0 %v439_v10  ;;  %328 = vmatprep.subr.bf16.mxu1 %v460_v26 }
  0x17   :  { %417 = vmatpush3.bf16.msra.mxu0 %v440_v14  ;;  %329 = vmatpush1.bf16.msra.mxu1 %v462_v27 }
  0x18   :  { %418 = vmatprep.subr.bf16.mxu0 %v441_v16  ;;  %330 = vmatprep.subr.bf16.mxu1 %v463_v28 }
  0x1b   :  { %419 = vmatpush3.bf16.msra.mxu0 %v442_v18  ;;  %331 = vmatpush1.bf16.msra.mxu1 %v465_v29 }
  0x1c   :  { %420 = vmatprep.subr.bf16.mxu0 %v443_v20  ;;  %332 = vmatprep.subr.bf16.mxu1 %v466_v30 }
  0x1f   :  { %421 = vmatpush3.bf16.msra.mxu0 %v444_v23  ;;  %333 = vmatpush1.bf16.msra.mxu1 %v468_v31 }
  0x20   :  { %334 = vmatprep.subr.bf16.mxu1 %v469_v32 }
  0x22   :  { %201 = vmatmul.mubr.bf16.vlgmr.msra.gmra.mxu0 %v445_v25 }
  0x23   :  { %335 = vmatpush1.bf16.msra.mxu1 %v471_v33 }
  0xe2   :  { %v422_v35 = vpop.f32.mrf.mxu0 }
  0xe4   :  { %v423_v36 = vpop.f32.mrf.mxu0 }
  0xe5   :  { %v424_v37 = vadd.f32 %v423_v36, %v422_v35 }
  0xe6   :  { %v425_v39 = vpop.f32.mrf.mxu0 }
  0xe7   :  { %v203_v41 = vadd.f32 %v424_v37, %v371_v38 }
  0xe8   :  { %v426_v40 = vpop.f32.mrf.mxu0 }
  0xe9   :  { %v427_v42 = vadd.f32 %v426_v40, %v425_v39  ;;  %v209_v44 = vmax.f32 %v203_v41, 0.0 }
  0xeb   :  { %v206_v43 = vadd.f32 %v427_v42, %v371_v38 }
  0xed   :  { %v210_v45 = vmax.f32 %v206_v43, 0.0 }
  0xef   :  { %v211_v46 = vpack.c.bf16 %v210_v45, %v209_v44 }
  0xf1   :  { %353 = vmatmul.mubr.bf16.vlgmr.msra.gmra.mxu1 %v211_v46 }
 0x1b1   :  { %v354_v54 = vpop.f32.mrf.mxu1 }
 0x1b2   :  { %v355_v55 = vadd.f32 %v354_v54, %v233_v52 }
 0x1b3   :  { %v356_v56 = vpop.f32.mrf.mxu1 }
 0x1b4   :  { %363 = vst [vmem:[%s628_s5] sm:$0xff] %v355_v55  ;;  %v357_v57 = vadd.f32 %v356_v56, %v237_v53 }
 0x1b5   :  { %v358_v58 = vpop.f32.mrf.mxu1 }
 0x1b6   :  { %364 = vst [vmem:[%s628_s5 + $0x8] sm:$0xff] %v357_v57  ;;  %v359_v59 = vadd.f32 %v358_v58, %v233_v52 }
 0x1b7   :  { %v360_v60 = vpop.f32.mrf.mxu1 }
 0x1b8   :  { %365 = vst [vmem:[%s628_s5 + $0x10] sm:$0xff] %v359_v59  ;;  %v361_v61 = vadd.f32 %v360_v60, %v237_v53 }
 0x1ba   :  { %366 = vst [vmem:[%s628_s5 + $0x18] sm:$0xff] %v361_v61 }

</bundles_post_ra>
